<compile_context>
chip_gen: v6e
topology: v6e:2x2x1
jax: 0.10.0
libtpu: 0.0.40
codegen_flags: <defaults>
</compile_context>

<pallas_src>
import math
import functools

import jax
import jax.numpy as jnp
from jax.experimental import pallas as pl
from jax.experimental.pallas import tpu as pltpu

LANES = 128  # TPU vreg lane width


# ----------------------------------------------------------------------------
# Glue: deterministic construction of the sinusoidal `pe` buffer (plain JAX).
# ----------------------------------------------------------------------------
def make_positional_encoding(d_model: int, max_len: int = 5000) -> jnp.ndarray:
    position = jnp.arange(max_len, dtype=jnp.float32)[:, None]            # (max_len, 1)
    div_term = jnp.exp(
        jnp.arange(0, d_model, 2, dtype=jnp.float32) * (-math.log(10000.0) / d_model)
    )
    pe = jnp.zeros((max_len, 1, d_model), dtype=jnp.float32)
    pe = pe.at[:, 0, 0::2].set(jnp.sin(position * div_term))
    pe = pe.at[:, 0, 1::2].set(jnp.cos(position * div_term))
    return pe


# ----------------------------------------------------------------------------
# Kernel: y = dropout(x + pe) on one (ts, B, D) block.
# ----------------------------------------------------------------------------
def _pe_dropout_kernel(seed_ref, x_ref, pe_ref, o_ref, *, p, training, ts, batch, d_model):
    # Add in f32 (pe buffer is f32, like the PyTorch module); cast on store.
    y = x_ref[...].astype(jnp.float32) + pe_ref[...]          # (ts,B,D) + (ts,1,D)

    if training and 0.0 < p < 1.0:
        # Global element index built low-rank: the two int multiplies run on the
        # (ts,B,1) row part; the (1,1,D) lane part is broadcast-added.
        shp = (ts, batch, 1)
        row = ((jax.lax.broadcasted_iota(jnp.int32, shp, 0) + pl.program_id(0) * ts)
               * batch + jax.lax.broadcasted_iota(jnp.int32, shp, 1))
        lane = jax.lax.broadcasted_iota(jnp.int32, (1, 1, d_model), 2)
        gidx = row * d_model + lane                            # (ts, B, D)

        # murmur3-style finalizer mixed with the *runtime* seed.  Tile-size
        # independent (depends only on the global element index + seed).
        # TODO(synk): on v7x one could use pltpu.prng_random_bits per tile
        # instead (fewer VPU ops) at the cost of tile-size-dependent masks.
        seed_u = seed_ref[0].astype(jnp.uint32)
        c = seed_u * jnp.uint32(2654435761) + jnp.uint32(0x1234567)
        h = gidx.astype(jnp.uint32) * jnp.uint32(0x9E3779B1) + c
        h = h ^ (h >> jnp.uint32(16))
        h = h * jnp.uint32(0x85EBCA6B)
        h = h ^ (h >> jnp.uint32(13))
        h = h * jnp.uint32(0xC2B2AE35)
        h = h ^ (h >> jnp.uint32(16))

        # Integer-threshold compare: P(keep) = 1 - p (to within 2^-24).
        thr = jnp.uint32(min((1 << 24) - 1, int(round(p * (1 << 24)))))
        keep = (h >> jnp.uint32(8)) >= thr
        y = jnp.where(keep, y * jnp.float32(1.0 / (1.0 - p)), jnp.float32(0.0))
    elif training and p >= 1.0:
        y = jnp.zeros_like(y)

    o_ref[...] = y.astype(o_ref.dtype)


# ----------------------------------------------------------------------------
# Tile-size / VMEM helpers (account for (8,128) layout padding).
# ----------------------------------------------------------------------------
def _padded_row_bytes(s2: int, s1: int, dtype) -> int:
    itemsize = jnp.dtype(dtype).itemsize
    sub = {4: 8, 2: 16, 1: 32}.get(itemsize, 8)
    return ((s2 + sub - 1) // sub * sub) * ((s1 + LANES - 1) // LANES * LANES) * itemsize


def _pick_seq_tile(S: int, x_row_bytes: int, target_bytes: int) -> int:
    ts = max(1, min(S, target_bytes // max(1, x_row_bytes)))
    if S >= 4:
        # Keep at least ~4 grid steps: double-buffer pipelining + even split
        # across the 2 TensorCores on v7x (dimension_semantics=("parallel",)).
        ts = min(ts, (S + 3) // 4)
    return ts


# ----------------------------------------------------------------------------
# Wrapper
# ----------------------------------------------------------------------------
def positional_encoding(x, pe, *, p: float = 0.1, training: bool = False,
                        seed=0, target_tile_bytes: int = 4 << 20):
    """x: (S, B, D); pe: (max_len, 1, D).  Returns dropout(x + pe[:S])."""
    S, B, D = x.shape
    assert pe.ndim == 3 and pe.shape[1] == 1 and pe.shape[2] == D
    assert S <= pe.shape[0], "sequence longer than positional-encoding buffer"

    pe_f = pe.astype(jnp.float32)                       # usually already f32 (no copy)
    out_dtype = jnp.result_type(x.dtype, jnp.float32)   # torch promotes against f32 pe

    x_row = _padded_row_bytes(B, D, x.dtype)
    ts = _pick_seq_tile(S, x_row, target_tile_bytes)
    grid = pl.cdiv(S, ts)                                # ragged last block is fine

    step_bytes = ts * (x_row + _padded_row_bytes(B, D, out_dtype)
                       + _padded_row_bytes(1, D, jnp.float32))
    vmem_limit = int(min(64 << 20, max(32 << 20, 2 * step_bytes + (4 << 20))))

    kern = functools.partial(_pe_dropout_kernel, p=float(p), training=bool(training),
                             ts=ts, batch=B, d_model=D)
    seed_arr = jnp.asarray(seed, dtype=jnp.int32).reshape((1,))   # runtime scalar

    return pl.pallas_call(
        kern,
        out_shape=jax.ShapeDtypeStruct((S, B, D), out_dtype),
        grid_spec=pltpu.PrefetchScalarGridSpec(
            num_scalar_prefetch=1,
            grid=(grid,),
            in_specs=[
                pl.BlockSpec((ts, B, D), lambda i, seed_ref: (i, 0, 0)),
                pl.BlockSpec((ts, 1, D), lambda i, seed_ref: (i, 0, 0)),
            ],
            out_specs=pl.BlockSpec((ts, B, D), lambda i, seed_ref: (i, 0, 0)),
        ),
        compiler_params=pltpu.CompilerParams(
            dimension_semantics=("parallel",),
            vmem_limit_bytes=vmem_limit,
        ),
    )(seed_arr, x, pe_f)


# ----------------------------------------------------------------------------
# Self-test
# ----------------------------------------------------------------------------
if __name__ == "__main__":
    dropout_p = 0.1

    def check_train(out, ref, prob):
        kept = out != 0.0
        n_kept = int(kept.sum())
        assert 0 < n_kept < out.size, "dropout produced a degenerate mask"
        assert jnp.allclose(jnp.where(kept, out, 0.0),
                            jnp.where(kept, ref / (1.0 - prob), 0.0), atol=1e-5)

    # Case 1: the module's small shape (S=8, B=2, d_model=32).
    S, B, D = 8, 2, 32
    pe = make_positional_encoding(D, max_len=64)
    x = jax.random.normal(jax.random.PRNGKey(0), (S, B, D), dtype=jnp.float32)
    ref = x + pe[:S]

    out_eval = jax.block_until_ready(positional_encoding(x, pe, p=dropout_p, training=False))
    assert out_eval.shape == (S, B, D)
    assert jnp.allclose(out_eval, ref, atol=1e-6), "eval-mode mismatch vs x + pe"

    out_train = jax.block_until_ready(
        positional_encoding(x, pe, p=dropout_p, training=True, seed=1234))
    check_train(out_train, ref, dropout_p)

    # Case 2: lane-dense d_model (D=128); mask must be tiling-independent.
    S2, B2, D2 = 16, 2, 128
    pe2 = make_positional_encoding(D2, max_len=64)
    x2 = jax.random.normal(jax.random.PRNGKey(1), (S2, B2, D2), dtype=jnp.float32)
    ref2 = x2 + pe2[:S2]

    out2 = jax.block_until_ready(
        positional_encoding(x2, pe2, p=dropout_p, training=False, target_tile_bytes=4096))
    assert jnp.allclose(out2, ref2, atol=1e-6)

    out2_t = jax.block_until_ready(
        positional_encoding(x2, pe2, p=dropout_p, training=True, seed=7, target_tile_bytes=4096))
    check_train(out2_t, ref2, dropout_p)

    out2_t_big = jax.block_until_ready(
        positional_encoding(x2, pe2, p=dropout_p, training=True, seed=7))
    assert jnp.array_equal(out2_t, out2_t_big), "dropout mask depends on tiling"

    # Case 3: ragged grid (S not a multiple of the sequence tile).
    S3, B3, D3 = 10, 3, 128
    pe3 = make_positional_encoding(D3, max_len=32)
    x3 = jax.random.normal(jax.random.PRNGKey(2), (S3, B3, D3), dtype=jnp.float32)
    ref3 = x3 + pe3[:S3]

    out3 = jax.block_until_ready(positional_encoding(x3, pe3, p=dropout_p, training=False))
    assert jnp.allclose(out3, ref3, atol=1e-6)
    out3_t = jax.block_until_ready(
        positional_encoding(x3, pe3, p=dropout_p, training=True, seed=3))
    check_train(out3_t, ref3, dropout_p)

    print("KERNEL_OK")
</pallas_src>

<mosaic_0001>
module attributes {stable_mosaic.version = 11 : i64} {
  func.func @_pe_dropout_kernel(%arg0: i32, %arg1: memref<1xi32, #tpu.memory_space<smem>>, %arg2: memref<2x2x32xf32, #tpu.memory_space<vmem>>, %arg3: memref<2x1x32xf32, #tpu.memory_space<vmem>>, %arg4: memref<2x2x32xf32, #tpu.memory_space<vmem>>) attributes {dimension_semantics = [#tpu.dimension_semantics<parallel>], iteration_bounds = array<i64: 4>, scalar_prefetch = 1 : i64, scratch_operands = 0 : i64, tpu.core_type = #tpu.core_type<tc>, window_params = [{transform_indices = @transform_0, window_bounds = array<i64: 2, 2, 32>}, {transform_indices = @transform_1, window_bounds = array<i64: 2, 1, 32>}, {transform_indices = @transform_2, window_bounds = array<i64: 2, 2, 32>}]} {
    %c0 = arith.constant 0 : index
    %c0_0 = arith.constant 0 : index
    %c0_1 = arith.constant 0 : index
    %0 = vector.load %arg2[%c0, %c0_0, %c0_1] : memref<2x2x32xf32, #tpu.memory_space<vmem>>, vector<2x2x32xf32>
    %c0_2 = arith.constant 0 : index
    %c0_3 = arith.constant 0 : index
    %c0_4 = arith.constant 0 : index
    %1 = vector.load %arg3[%c0_2, %c0_3, %c0_4] : memref<2x1x32xf32, #tpu.memory_space<vmem>>, vector<2x1x32xf32>
    %2 = vector.broadcast %1 : vector<2x1x32xf32> to vector<2x2x32xf32>
    %3 = arith.addf %0, %2 : vector<2x2x32xf32>
    %c0_5 = arith.constant 0 : index
    %c0_6 = arith.constant 0 : index
    %c0_7 = arith.constant 0 : index
    %4 = vector.load %arg4[%c0_5, %c0_6, %c0_7] : memref<2x2x32xf32, #tpu.memory_space<vmem>>, vector<2x2x32xf32>
    tpu.vector_store %arg4[%c0_5, %c0_6, %c0_7], %3 {strides = array<i32>} : memref<2x2x32xf32, #tpu.memory_space<vmem>>, vector<2x2x32xf32>,
    return
  }
  func.func @transform_0(%arg0: i32, %arg1: memref<1xi32, #tpu.memory_space<smem>>) -> (i32, i32, i32) {
    %c0_i32 = arith.constant 0 : i32
    %c0_i32_0 = arith.constant 0 : i32
    %c0_i32_1 = arith.constant 0 : i32
    return %arg0, %c0_i32, %c0_i32_0 : i32, i32, i32
  }
  func.func @transform_1(%arg0: i32, %arg1: memref<1xi32, #tpu.memory_space<smem>>) -> (i32, i32, i32) {
    %c0_i32 = arith.constant 0 : i32
    %c0_i32_0 = arith.constant 0 : i32
    %c0_i32_1 = arith.constant 0 : i32
    return %arg0, %c0_i32, %c0_i32_0 : i32, i32, i32
  }
  func.func @transform_2(%arg0: i32, %arg1: memref<1xi32, #tpu.memory_space<smem>>) -> (i32, i32, i32) {
    %c0_i32 = arith.constant 0 : i32
    %c0_i32_0 = arith.constant 0 : i32
    %c0_i32_1 = arith.constant 0 : i32
    return %arg0, %c0_i32, %c0_i32_0 : i32, i32, i32
  }
}

</mosaic_0001>

<bundles_post_ra>
// kernel: tpu_custom_call.1
= control target key start
LH: loop header
LB: loop body
LE: loop exit
PB: predicated region body
PF: predicated region fallthrough
CT: control target
= control target key end

     0   :  { %9 = vsyncpa [#allocation5], 0  ;;  %s518_s0 = inlined_call_operand.<no memory space> [shape: s32[1], index: 0, kind: input, shape index: {}]   ;;  %s519_s1 = inlined_call_operand.vmem [shape: f32[8,2,32], index: 1, kind: input, shape index: {}]   ;;  %s520_s2 = inlined_call_operand.vmem [shape: f32[64,1,32], index: 2, kind: input, shape index: {}]   ;;  %s521_s3 = inlined_call_operand.hbm [shape: f32[8,2,32], index: 3, kind: output, shape index: {}]  }
   0x1   :  { %11 = vsyncpa [#allocation5 + $0x1], 0  ;;  %s414_s12 = smov 0   ;;  %s416_s13 = smov 0  }
   0x2   :  { %s418_s14 = smov 0   ;;  %s420_s15 = smov 0  }
   0x3 LB: > { %s435_s0 = sadd.s32 4294967295, %s389_s15   ;;  %s272_s16 = sadd.s32 4294967294, %s389_s15   ;;  %s389_s15 = sphi %s420_s15, %s527_s15   ;;  %s385_s14 = sphi %s418_s14, %s526_s14   ;;  %s381_s13 = sphi %s416_s13, %s525_s13   ;;  %s377_s12 = sphi %s414_s12, %s524_s12  }
   0x4   : > { %s439_s17 = sadd.s32 1, %s389_s15   ;;  %s76_s18 = sadd.s32 1, %s385_s14 }
   0x5   : > { %s73_s19 = ssub.s32 %s389_s15, %s439_s17  ;;  %p86_p0 = scmp.ne.s32.totalorder %s385_s14, %s381_s13 }
   0x6   : > { %p74_p1 = scmp.eq.s32.totalorder %s73_s19, 0  ;;  %p87_p2 = scmp.eq.s32.totalorder %s435_s0, 3 }
   0x7   : > { %p92_p3 = scmp.ne.s32.totalorder %s381_s13, %s377_s12  ;;  %p93_p4 = scmp.eq.s32.totalorder %s272_s16, 3 }
   0x8   : > { %s450_s20 = scalar_select %p74_p1, %s385_s14, %s76_s18  }
   0x9   : > { %p452_p5 = por %p87_p2, %p86_p0  ;;  %p456_p6 = por %p93_p4, %p92_p3 }
   0xa   : > { %p275_p7 = scmp.ge.s32.totalorder %s389_s15, 1  ;;  %p128_p8 = scmp.lt.s32.totalorder %s389_s15, 5 }
   0xc   : > { %p129_p9 = pnand %p275_p7, %p128_p8 }
   0xd   : > { %s151_s23 = sand.u32 (!%p129_p9), 1, %s381_s13   ;;  %s277_s24 = sshll.u32 (!%p129_p9), %s435_s0, 1 }
   0xe   : > { %132 = sbr.rel (%p129_p9) target bundleno = 45 (0x2d), region = 28  ;;  %s276_s25 = sshll.u32 (!%p129_p9), %s151_s23, 2 }
   0xf   : > { %p155_p10 = scmp.lt.s32.totalorder (!%p129_p9), %s277_s24, 7  ;;  %p161_p11 = scmp.lt.s32.totalorder (!%p129_p9), %s277_s24, 63 }
  0x10   : > { %s153_s7 = scalar_lea.vmem (!%p129_p9), [#allocation4], %s276_s25  ;;  %s287_s9 = sshll.u32 (!%p129_p9), %s435_s0, 6 }
  0x11   : > { %s201_s8 = sshll.u32 (!%p129_p9), %s153_s7, 4  ;;  %s476_s16 = scalar_lea.hbm (!%p129_p9), %s521_s3, %s287_s9  ;;  %s471_s8 = int_to_ptr.vmem [resolvable:$true] %s201_s8 }
  0x12   : > { %s478_s18 = scalar_lea.sflag (!%p129_p9), [#allocation5], %s151_s23  ;;  %s329_s19 = scalar_lea.vmem (!%p129_p9), %s471_s8, 64 }
  0x13   : > { %s156_s26 = scalar_select %p155_p10, %s277_s24, 7  ;;  %vm184_vm0 = vcmask 254976  }
  0x14   : > { %s529_s24 = smov (!%p161_p11, %s277_s24), 63  ;;  %p330_p12 = scmp.ne.s32.totalorder %s471_s8, %s329_s19 }
  0x15   : > { %s278_s27 = sshll.u32 %s156_s26, 1  ;;  %s163_s6 = scalar_lea.vmem %s520_s2, %s529_s24 }
  0x16   : > { %s158_s30 = scalar_lea.vmem %s519_s1, %s278_s27  ;;  %v280_v1 = vld [vmem:[%s163_s6] ss:$0 sm:$0xff]  ;;  %v281_v4 = vld [vmem:[%s163_s6 + $0x1] ss:$0 sm:$0xff]  ;;  %p331_p13 = pnand %p330_p12, %p452_p5 }
  0x17   : > { %v166_v0 = vld [vmem:[%s158_s30] sm:$0x3]  ;;  %v167_v3 = vld [vmem:[%s158_s30 + $0x2] sm:$0x3]  ;;  %s391_s0 = smov [#allocation4]  }
  0x18   : > { %v182_v2 = vadd.f32 %v280_v1, %v166_v0  ;;  %v183_v5 = vadd.f32 %v281_v4, %v167_v3  ;;  %p332_p0 = pneg %p331_p13  ;;  %s333_s24 = sshll.u32 %s391_s0, 4  ;;  %s334_s24 = int_to_ptr.vmem [resolvable:$false] %s333_s24 }
  0x19   : > { %s335_s25 = scalar_lea.vmem %s334_s24, 128  ;;  %p336_p1 = scmp.lt.s32.totalorder %s471_s8, %s334_s24 }
  0x1a   : > { %185 = vst.msk [vmem:[%s153_s7] sm:$0x3] %vm184_vm0, %v182_v2  ;;  %186 = vst.msk [vmem:[%s153_s7 + $0x2] sm:$0x3] %vm184_vm0, %v183_v5  ;;  %p337_p2 = scmp.lt.s32.totalorder %s335_s25, %s329_s19 }
  0x1c   : > { %p338_p3 = por %p337_p2, %p336_p1 }
  0x1e   : > { %p339_p4 = pnand %p338_p3, %p332_p0 }
  0x20   : > { %342 = shalt.err (!%p339_p4)
}
  0x21   : > { %s343_s23 = scalar_lea.hbm %s476_s16, 64  ;;  %s347_s28 = scalar_lea.hbm %s521_s3, 256 }
  0x22   : > { %p344_p7 = scmp.ne.s32.totalorder %s476_s16, %s343_s23  ;;  %p348_p10 = scmp.lt.s32.totalorder %s476_s16, %s521_s3 }
  0x23   : > { %p349_p11 = scmp.lt.s32.totalorder %s347_s28, %s343_s23 }
  0x24   : > { %p345_p8 = pnand %p344_p7, %p452_p5 }
  0x25   : > { %p350_p12 = por %p349_p11, %p348_p10 }
  0x26   : > { %p346_p9 = pneg %p345_p8 }
  0x28   : > { %p351_p13 = pnand %p350_p12, %p346_p9 }
  0x2a   : > { %354 = shalt.err (!%p351_p13)
}
  0x2b   : > { %s392_s4 = smov 32   ;;  %s393_s5 = smov 2  }
  0x2c   : > { %288 = dma.vmem_to_hbm [thread:$0]  (%p452_p5), %s471_s8, 64, %s476_s16, %s478_s18, %s392_s4, %s392_s4, %s393_s5  }
  0x2d PF: > { %p294_p0 = scmp.ge.s32.totalorder %s389_s15, 2  ;;  %s216_s6 = sand.u32 1, %s377_s12  }
  0x2e   : > { %s217_s7 = scalar_lea.sflag [#allocation5], %s216_s6 }
  0x2f   : > { %p291_p1 = pnand %p294_p0, %p456_p6 }
  0x31   : > { %p292_p2 = pneg %p291_p1 }
  0x33   : > { %372 = dma.done.wait (%p292_p2), %s217_s7, 64  }
  0x34   : > { %374 = vsyncadd (%p292_p2), %s217_s7, 4294967232  ;;  %p14_p3 = scmp.ge.s32.totalorder %s439_s17, 6   ;;  %s524_s12 = smov %s381_s13 }
  0x35   : > { %s525_s13 = smov %s385_s14  ;;  %s526_s14 = smov %s450_s20 }
  0x36   : > { %s527_s15 = smov %s439_s17  ;;  %16 = sbr.rel (!%p14_p3) target bundleno = 3 (0x3), region = 66 }
  0x3b   :  { %222 = vsyncpa [#allocation5], 1 }
  0x3c   :  { %224 = vsyncpa [#allocation5 + $0x1], 1 }

</bundles_post_ra>
